<compile_context>
chip_gen: v7x
topology: tpu7x:2x2x1
jax: 0.10.0
libtpu: 0.0.40
codegen_flags: <defaults>
</compile_context>

<pallas_src>
import functools

import jax
import jax.numpy as jnp
from jax.experimental import pallas as pl
from jax.experimental.pallas import tpu as pltpu


# ----------------------------------------------------------------------------
# Tiling plan
# ----------------------------------------------------------------------------
def _min_parallel_tiles():
    """>=2 parallel grid steps lets Mosaic shard across the 2 TensorCores of
    v7x / megacore chips; on single-TC chips (v5e/v6e) forcing extra tiles only
    pads lanes and adds grid-step overhead."""
    try:
        kind = jax.devices()[0].device_kind.lower()
    except Exception:
        return 2
    if any(tag in kind for tag in ("v5 lite", "v5e", "v6 lite", "v6e", "v6")):
        return 1
    return 2


def _plan_lanes(n, *, min_tiles=1, max_tile=4096):
    """Lane tiling: tile is a multiple of 128 sized near the ~85%-of-roofline
    knee (512-4096 lanes) but never (much) larger than the padded problem.
    Returns (tile, num_tiles, padded_n)."""
    per_tile = 128 * pl.cdiv(n, 128 * min_tiles)
    tile = min(max_tile, per_tile)
    n_tiles = max(min_tiles, pl.cdiv(n, tile))
    return tile, n_tiles, tile * n_tiles


# ----------------------------------------------------------------------------
# Kernel 1: PReLU + 1x1 Conv2d (bn_chan -> n_src*bn_chan).
# One lane-dense (oc, bn_chan) @ (bn_chan, TL) MXU matmul per (stage, tile).
# ----------------------------------------------------------------------------
def _prelu_conv2d_kernel(alpha_ref, x_ref, w_ref, b_ref, o_ref):
    a = alpha_ref[0]                                   # PReLU shared alpha (SMEM)
    x = x_ref[...].astype(jnp.float32)                 # (bn_chan, TL)
    xp = jnp.where(x > 0, x, a * x).astype(jnp.bfloat16)
    y = jnp.dot(w_ref[...], xp, preferred_element_type=jnp.float32) + b_ref[...]
    o_ref[...] = y.astype(o_ref.dtype)                 # (oc, TL) -> bf16


# ----------------------------------------------------------------------------
# Kernel 2 (fused): stacked tanh/sigmoid gated conv -> mask conv (no bias) ->
# ReLU -> * e -> free-filterbank decoder frame matmul.  Output stays
# lane-dense in L; the transposed-conv overlap-add happens in wrapper glue.
# ----------------------------------------------------------------------------
def _fused_mask_decoder_kernel(y_ref, wog_ref, bog_ref, wm_ref, e_ref, ft_ref,
                               o_ref, *, bn_chan):
    h = y_ref[...]                                                   # (bn, TL) bf16
    u = jnp.dot(wog_ref[...], h, preferred_element_type=jnp.float32) + bog_ref[...]
    t = jnp.tanh(u[:bn_chan, :])                                     # net_out
    g = jax.nn.sigmoid(u[bn_chan:, :])                               # net_gate
    tg = (t * g).astype(jnp.bfloat16)
    m = jnp.dot(wm_ref[...], tg, preferred_element_type=jnp.float32)  # (in_chan, TL)
    masked = (jnp.maximum(m, 0.0) * e_ref[...].astype(jnp.float32)).astype(jnp.bfloat16)
    frames = jnp.dot(ft_ref[...], masked, preferred_element_type=jnp.float32)
    o_ref[...] = frames.astype(o_ref.dtype)                          # (ks, TL) f32


# ----------------------------------------------------------------------------
# Parameters (deterministic synthetic init; shapes follow the module __init__).
# Matmul weights stored bf16 (streamed), biases/alpha f32.
# ----------------------------------------------------------------------------
def init_params(key, kernel_size, in_chan, n_src, bn_chan):
    ks = jax.random.split(key, 8)
    bf16 = jnp.bfloat16

    def gn(k, shape, scale=0.1):
        return (scale * jax.random.normal(k, shape)).astype(jnp.float32)

    wo = gn(ks[2], (bn_chan, bn_chan))          # net_out Conv1d weight
    bo = gn(ks[3], (bn_chan, 1))
    wg = gn(ks[4], (bn_chan, bn_chan))          # net_gate Conv1d weight
    bg = gn(ks[5], (bn_chan, 1))
    filt = gn(ks[7], (in_chan, kernel_size))    # free decoder filters

    return {
        "prelu_alpha": jnp.asarray(0.25, jnp.float32),               # nn.PReLU default
        "w2d": gn(ks[0], (n_src * bn_chan, bn_chan)).astype(bf16),   # Conv2d 1x1
        "b2d": gn(ks[1], (n_src * bn_chan, 1)),
        "wog": jnp.concatenate([wo, wg], axis=0).astype(bf16),       # stacked (2*bn, bn)
        "bog": jnp.concatenate([bo, bg], axis=0),                    # (2*bn, 1) f32
        "wm": gn(ks[6], (in_chan, bn_chan)).astype(bf16),            # mask_net (no bias)
        "filt_t": filt.T.astype(bf16),                               # (ks, in_chan)
    }


# ----------------------------------------------------------------------------
# Forward wrapper
# ----------------------------------------------------------------------------
def single_decoder_forward(params, x, e, gap, *, kernel_size, in_chan, n_src, bn_chan):
    assert kernel_size % 2 == 0, "free decoder stride = kernel_size // 2"
    num_stages, bnc, K, S = x.shape
    assert bnc == bn_chan and K % 2 == 0 and S % 2 == 0
    stride = kernel_size // 2
    P = K // 2
    KS = K * S
    oc = n_src * bn_chan
    f32, bf16 = jnp.float32, jnp.bfloat16
    base_min = _min_parallel_tiles()

    # --- 1) PReLU + Conv2d 1x1: grid = (stage, lane-tile over K*S) ------------
    tl1, nt1, ks_pad = _plan_lanes(KS, min_tiles=1 if num_stages >= 2 else base_min)
    x3 = jnp.pad(x.reshape(num_stages, bn_chan, KS).astype(bf16),
                 ((0, 0), (0, 0), (0, ks_pad - KS)))
    alpha = jnp.asarray(params["prelu_alpha"], f32).reshape(1)

    conv2d_out = pl.pallas_call(
        _prelu_conv2d_kernel,
        out_shape=jax.ShapeDtypeStruct((num_stages, oc, ks_pad), bf16),
        grid=(num_stages, nt1),
        in_specs=[
            pl.BlockSpec(memory_space=pltpu.MemorySpace.SMEM),            # alpha
            pl.BlockSpec((None, bn_chan, tl1), lambda s, i: (s, 0, i)),   # x (streamed)
            pl.BlockSpec((oc, bn_chan), lambda s, i: (0, 0)),             # weight (resident)
            pl.BlockSpec((oc, 1), lambda s, i: (0, 0)),                   # bias
        ],
        out_specs=pl.BlockSpec((None, oc, tl1), lambda s, i: (s, 0, i)),
        compiler_params=pltpu.CompilerParams(
            dimension_semantics=("parallel", "parallel")),
    )(alpha, x3, params["w2d"], params["b2d"])

    # --- 2) DPRNN chunk overlap-add (50% overlap) ------------------------------
    # Shifted slices + add in the chunked layout (one fused XLA pass); only the
    # half-size summed tensor goes through the minor-dim transpose.
    # TODO(synk): this strided overlap-add could become a small Pallas shifted-
    # add kernel to avoid the XLA transpose pass entirely.
    c = conv2d_out[:, :, :KS].reshape(num_stages * n_src, bn_chan, K, S)
    summed = c[:, :, :P, 1:] + c[:, :, P:, :-1]                   # (B2, bn, P, S-1)
    y = jnp.transpose(summed, (0, 1, 3, 2)).reshape(
        num_stages * n_src, bn_chan, (S - 1) * P)
    if gap > 0:
        y = y[:, :, :-gap]
    B2, _, L = y.shape
    assert e.shape == (in_chan, L), (e.shape, L)

    # --- 3+4) fused gate/mask/ReLU/e-multiply + decoder frame matmul -----------
    # grid = (batch, lane-tile over L); e is broadcast across the batch axis via
    # its index_map (no jnp.tile materialization in HBM).
    tl2, nt2, l_pad = _plan_lanes(L, min_tiles=1 if B2 >= 2 else base_min)
    y3 = jnp.pad(y, ((0, 0), (0, 0), (0, l_pad - L)))             # bf16
    e_pad = jnp.pad(e.astype(bf16), ((0, 0), (0, l_pad - L)))

    frames = pl.pallas_call(
        functools.partial(_fused_mask_decoder_kernel, bn_chan=bn_chan),
        out_shape=jax.ShapeDtypeStruct((B2, kernel_size, l_pad), f32),
        grid=(B2, nt2),
        in_specs=[
            pl.BlockSpec((None, bn_chan, tl2), lambda b, i: (b, 0, i)),   # y (streamed)
            pl.BlockSpec((2 * bn_chan, bn_chan), lambda b, i: (0, 0)),    # stacked W (resident)
            pl.BlockSpec((2 * bn_chan, 1), lambda b, i: (0, 0)),          # stacked biases
            pl.BlockSpec((in_chan, bn_chan), lambda b, i: (0, 0)),        # mask W
            pl.BlockSpec((in_chan, tl2), lambda b, i: (0, i)),            # e (shared over b)
            pl.BlockSpec((kernel_size, in_chan), lambda b, i: (0, 0)),    # decoder filters^T
        ],
        out_specs=pl.BlockSpec((None, kernel_size, tl2), lambda b, i: (b, 0, i)),
        compiler_params=pltpu.CompilerParams(
            dimension_semantics=("parallel", "parallel")),
    )(y3, params["wog"], params["bog"], params["wm"], e_pad, params["filt_t"])

    # --- 5) ConvTranspose1d overlap-add (stride = ks // 2) ---------------------
    # Stride-shifted add on lane-dense half-frames first; only the half-size
    # (stride, L+1) tensor goes through the final transpose.
    A = frames[:, :stride, :L]
    Bh = frames[:, stride:, :L]
    ola = (jnp.pad(A, ((0, 0), (0, 0), (0, 1)))
           + jnp.pad(Bh, ((0, 0), (0, 0), (1, 0))))               # (B2, stride, L+1)
    out = jnp.transpose(ola, (0, 2, 1)).reshape(B2, (L + 1) * stride)
    return out.reshape(num_stages, n_src, (L - 1) * stride + kernel_size)


# ----------------------------------------------------------------------------
# Pure-JAX reference following the original torch op sequence (with the same
# bf16 streaming / f32 accumulation dtype flow so the check is tight).
# ----------------------------------------------------------------------------
def _over_add_ref(inp, gap):
    B, N, K, S = inp.shape
    P = K // 2
    inp = jnp.transpose(inp, (0, 1, 3, 2)).reshape(B, N, -1, K * 2)
    i1 = inp[:, :, :, :K].reshape(B, N, -1)[:, :, P:]
    i2 = inp[:, :, :, K:].reshape(B, N, -1)[:, :, :-P]
    out = i1 + i2
    if gap > 0:
        out = out[:, :, :-gap]
    return out


def _reference_forward(params, x, e, gap, *, kernel_size, in_chan, n_src, bn_chan):
    f32, bf16 = jnp.float32, jnp.bfloat16
    num_stages, _, K, S = x.shape
    stride = kernel_size // 2
    oc = n_src * bn_chan
    a = params["prelu_alpha"].astype(f32)

    xb = x.astype(bf16).astype(f32)
    xp = jnp.where(xb > 0, xb, a * xb).astype(bf16)
    c = (jnp.einsum("oc,ncks->noks", params["w2d"], xp, preferred_element_type=f32)
         + params["b2d"].reshape(1, oc, 1, 1)).astype(bf16)
    x4 = c.reshape(num_stages * n_src, bn_chan, K, S)
    y = _over_add_ref(x4, gap)                                     # (B2, bn, L) bf16
    B2, _, L = y.shape

    wo, wg = params["wog"][:bn_chan], params["wog"][bn_chan:]
    bo, bg = params["bog"][:bn_chan], params["bog"][bn_chan:]
    t = jnp.tanh(jnp.einsum("oc,bcl->bol", wo, y, preferred_element_type=f32)
                 + bo.reshape(1, bn_chan, 1))
    g = jax.nn.sigmoid(jnp.einsum("oc,bcl->bol", wg, y, preferred_element_type=f32)
                       + bg.reshape(1, bn_chan, 1))
    tg = (t * g).astype(bf16)
    m = jnp.einsum("oc,bcl->bol", params["wm"], tg, preferred_element_type=f32)
    masked = (jnp.maximum(m, 0.0) * e.astype(bf16).astype(f32)[None]).astype(bf16)
    frames = jnp.einsum("kc,bcl->bkl", params["filt_t"], masked,
                        preferred_element_type=f32)
    T = (L - 1) * stride + kernel_size
    ref = jnp.zeros((B2, T), f32)
    for l in range(L):                                             # ConvTranspose1d OLA
        ref = ref.at[:, l * stride:l * stride + kernel_size].add(frames[:, :, l])
    return ref.reshape(num_stages, n_src, T)


if __name__ == "__main__":
    # Small, forward-consistent shapes.
    kernel_size = 16          # -> decoder stride 8
    in_chan = 32
    n_src = 2
    bn_chan = 16
    chunk_size = 8            # K
    num_stages = 2
    S = 6                     # number of chunks (even, as produced by segmentation)
    gap = 3                   # segmentation padding removed by overlap-add

    key = jax.random.PRNGKey(0)
    kx, ke, kp = jax.random.split(key, 3)
    params = init_params(kp, kernel_size, in_chan, n_src, bn_chan)

    x = jax.random.normal(kx, (num_stages, bn_chan, chunk_size, S), jnp.float32)
    P = chunk_size // 2
    L = S * P - P - gap
    e = jax.random.normal(ke, (in_chan, L), jnp.float32)

    fwd = jax.jit(
        functools.partial(single_decoder_forward,
                          kernel_size=kernel_size, in_chan=in_chan,
                          n_src=n_src, bn_chan=bn_chan),
        static_argnums=(3,))          # gap is static (shape-affecting)
    out = jax.block_until_ready(fwd(params, x, e, gap))

    expected_T = (L - 1) * (kernel_size // 2) + kernel_size
    assert out.shape == (num_stages, n_src, expected_T), out.shape
    assert bool(jnp.all(jnp.isfinite(out)))

    ref = _reference_forward(params, x, e, gap, kernel_size=kernel_size,
                             in_chan=in_chan, n_src=n_src, bn_chan=bn_chan)
    assert bool(jnp.allclose(out, ref, atol=1e-2, rtol=1e-2)), \
        float(jnp.max(jnp.abs(out - ref)))

    print("KERNEL_OK")
</pallas_src>

<mosaic_0001>
module attributes {stable_mosaic.version = 11 : i64} {
  func.func @_prelu_conv2d_kernel(%arg0: i32, %arg1: i32, %arg2: memref<1xf32, #tpu.memory_space<smem>>, %arg3: memref<1x16x128xbf16, #tpu.memory_space<vmem>>, %arg4: memref<32x16xbf16, #tpu.memory_space<vmem>>, %arg5: memref<32x1xf32, #tpu.memory_space<vmem>>, %arg6: memref<1x32x128xbf16, #tpu.memory_space<vmem>>) attributes {dimension_semantics = [#tpu.dimension_semantics<parallel>, #tpu.dimension_semantics<parallel>], iteration_bounds = array<i64: 2, 1>, scalar_prefetch = 0 : i64, scratch_operands = 0 : i64, tpu.core_type = #tpu.core_type<tc>, window_params = [{transform_indices = @transform_0, window_bounds = array<i64: 1>}, {transform_indices = @transform_1, window_bounds = array<i64: 1, 16, 128>}, {pipeline_mode = #tpu.pipeline_mode<synchronous>, transform_indices = @transform_2, window_bounds = array<i64: 32, 16>}, {pipeline_mode = #tpu.pipeline_mode<synchronous>, transform_indices = @transform_3, window_bounds = array<i64: 32, 1>}, {transform_indices = @transform_4, window_bounds = array<i64: 1, 32, 128>}]} {
    %c0 = arith.constant 0 : index
    %0 = memref.load %arg2[%c0] : memref<1xf32, #tpu.memory_space<smem>>
    %c0_0 = arith.constant 0 : index
    %c0_1 = arith.constant 0 : index
    %c0_2 = arith.constant 0 : index
    %1 = vector.load %arg3[%c0_0, %c0_1, %c0_2] : memref<1x16x128xbf16, #tpu.memory_space<vmem>>, vector<1x16x128xbf16>
    %2 = vector.shape_cast %1 : vector<1x16x128xbf16> to vector<16x128xbf16>
    %3 = arith.extf %2 : vector<16x128xbf16> to vector<16x128xf32>
    %cst = arith.constant 0.000000e+00 : f32
    %4 = vector.broadcast %cst : f32 to vector<16x128xf32>
    %5 = arith.cmpf ogt, %3, %4 : vector<16x128xf32>
    %6 = vector.broadcast %0 : f32 to vector<16x128xf32>
    %7 = arith.mulf %6, %3 : vector<16x128xf32>
    %8 = arith.select %5, %3, %7 : vector<16x128xi1>, vector<16x128xf32>
    %9 = arith.truncf %8 : vector<16x128xf32> to vector<16x128xbf16>
    %c0_3 = arith.constant 0 : index
    %c0_4 = arith.constant 0 : index
    %10 = vector.load %arg4[%c0_3, %c0_4] : memref<32x16xbf16, #tpu.memory_space<vmem>>, vector<32x16xbf16>
    %cst_5 = arith.constant dense<0.000000e+00> : vector<32x128xf32>
    %11 = tpu.matmul %10, %9, %cst_5 {dimension_numbers = #tpu.dot_dimension_numbers<[1], [0], [0], [1], [0, 0, 1, 1], [], []>} : vector<32x16xbf16>, vector<16x128xbf16>, vector<32x128xf32> -> vector<32x128xf32>
    %c0_6 = arith.constant 0 : index
    %c0_7 = arith.constant 0 : index
    %12 = vector.load %arg5[%c0_6, %c0_7] : memref<32x1xf32, #tpu.memory_space<vmem>>, vector<32x1xf32>
    %13 = vector.broadcast %12 : vector<32x1xf32> to vector<32x128xf32>
    %14 = arith.addf %11, %13 : vector<32x128xf32>
    %15 = arith.truncf %14 : vector<32x128xf32> to vector<32x128xbf16>
    %c0_8 = arith.constant 0 : index
    %c0_9 = arith.constant 0 : index
    %c0_10 = arith.constant 0 : index
    %16 = vector.load %arg6[%c0_8, %c0_9, %c0_10] : memref<1x32x128xbf16, #tpu.memory_space<vmem>>, vector<1x32x128xbf16>
    %17 = vector.shape_cast %16 : vector<1x32x128xbf16> to vector<32x128xbf16>
    %18 = vector.shape_cast %15 : vector<32x128xbf16> to vector<1x32x128xbf16>
    tpu.vector_store %arg6[%c0_8, %c0_9, %c0_10], %18 {strides = array<i32>} : memref<1x32x128xbf16, #tpu.memory_space<vmem>>, vector<1x32x128xbf16>,
    return
  }
  func.func @transform_0(%arg0: i32, %arg1: i32) -> i32 {
    %c0_i32 = arith.constant 0 : i32
    %c0_i32_0 = arith.constant 0 : i32
    return %c0_i32 : i32
  }
  func.func @transform_1(%arg0: i32, %arg1: i32) -> (i32, i32, i32) {
    %c0_i32 = arith.constant 0 : i32
    %c0_i32_0 = arith.constant 0 : i32
    return %arg0, %c0_i32, %arg1 : i32, i32, i32
  }
  func.func @transform_2(%arg0: i32, %arg1: i32) -> (i32, i32) {
    %c0_i32 = arith.constant 0 : i32
    %c0_i32_0 = arith.constant 0 : i32
    %c0_i32_1 = arith.constant 0 : i32
    return %c0_i32, %c0_i32_0 : i32, i32
  }
  func.func @transform_3(%arg0: i32, %arg1: i32) -> (i32, i32) {
    %c0_i32 = arith.constant 0 : i32
    %c0_i32_0 = arith.constant 0 : i32
    %c0_i32_1 = arith.constant 0 : i32
    return %c0_i32, %c0_i32_0 : i32, i32
  }
  func.func @transform_4(%arg0: i32, %arg1: i32) -> (i32, i32, i32) {
    %c0_i32 = arith.constant 0 : i32
    %c0_i32_0 = arith.constant 0 : i32
    return %arg0, %c0_i32, %arg1 : i32, i32, i32
  }
}

module attributes {stable_mosaic.version = 11 : i64} {
  func.func @_fused_mask_decoder_kernel(%arg0: i32, %arg1: i32, %arg2: memref<1x16x128xbf16, #tpu.memory_space<vmem>>, %arg3: memref<32x16xbf16, #tpu.memory_space<vmem>>, %arg4: memref<32x1xf32, #tpu.memory_space<vmem>>, %arg5: memref<32x16xbf16, #tpu.memory_space<vmem>>, %arg6: memref<32x128xbf16, #tpu.memory_space<vmem>>, %arg7: memref<16x32xbf16, #tpu.memory_space<vmem>>, %arg8: memref<1x16x128xf32, #tpu.memory_space<vmem>>) attributes {dimension_semantics = [#tpu.dimension_semantics<parallel>, #tpu.dimension_semantics<parallel>], iteration_bounds = array<i64: 4, 1>, scalar_prefetch = 0 : i64, scratch_operands = 0 : i64, tpu.core_type = #tpu.core_type<tc>, window_params = [{transform_indices = @transform_0, window_bounds = array<i64: 1, 16, 128>}, {pipeline_mode = #tpu.pipeline_mode<synchronous>, transform_indices = @transform_1, window_bounds = array<i64: 32, 16>}, {pipeline_mode = #tpu.pipeline_mode<synchronous>, transform_indices = @transform_2, window_bounds = array<i64: 32, 1>}, {pipeline_mode = #tpu.pipeline_mode<synchronous>, transform_indices = @transform_3, window_bounds = array<i64: 32, 16>}, {transform_indices = @transform_4, window_bounds = array<i64: 32, 128>}, {pipeline_mode = #tpu.pipeline_mode<synchronous>, transform_indices = @transform_5, window_bounds = array<i64: 16, 32>}, {transform_indices = @transform_6, window_bounds = array<i64: 1, 16, 128>}]} {
    %c0 = arith.constant 0 : index
    %c0_0 = arith.constant 0 : index
    %c0_1 = arith.constant 0 : index
    %0 = vector.load %arg2[%c0, %c0_0, %c0_1] : memref<1x16x128xbf16, #tpu.memory_space<vmem>>, vector<1x16x128xbf16>
    %1 = vector.shape_cast %0 : vector<1x16x128xbf16> to vector<16x128xbf16>
    %c0_2 = arith.constant 0 : index
    %c0_3 = arith.constant 0 : index
    %2 = vector.load %arg3[%c0_2, %c0_3] : memref<32x16xbf16, #tpu.memory_space<vmem>>, vector<32x16xbf16>
    %cst = arith.constant dense<0.000000e+00> : vector<32x128xf32>
    %3 = tpu.matmul %2, %1, %cst {dimension_numbers = #tpu.dot_dimension_numbers<[1], [0], [0], [1], [0, 0, 1, 1], [], []>} : vector<32x16xbf16>, vector<16x128xbf16>, vector<32x128xf32> -> vector<32x128xf32>
    %c0_4 = arith.constant 0 : index
    %c0_5 = arith.constant 0 : index
    %4 = vector.load %arg4[%c0_4, %c0_5] : memref<32x1xf32, #tpu.memory_space<vmem>>, vector<32x1xf32>
    %5 = vector.broadcast %4 : vector<32x1xf32> to vector<32x128xf32>
    %6 = arith.addf %3, %5 : vector<32x128xf32>
    %7 = vector.extract_strided_slice %6 {offsets = [0, 0], sizes = [16, 128], strides = [1, 1]} : vector<32x128xf32> to vector<16x128xf32>
    %8 = math.tanh %7 : vector<16x128xf32>
    %9 = vector.extract_strided_slice %6 {offsets = [16, 0], sizes = [16, 128], strides = [1, 1]} : vector<32x128xf32> to vector<16x128xf32>
    %10 = arith.negf %9 : vector<16x128xf32>
    %11 = math.exp %10 : vector<16x128xf32>
    %cst_6 = arith.constant 1.000000e+00 : f32
    %12 = vector.broadcast %cst_6 : f32 to vector<16x128xf32>
    %13 = arith.addf %12, %11 : vector<16x128xf32>
    %14 = arith.divf %12, %13 : vector<16x128xf32>
    %15 = arith.mulf %8, %14 : vector<16x128xf32>
    %16 = arith.truncf %15 : vector<16x128xf32> to vector<16x128xbf16>
    %c0_7 = arith.constant 0 : index
    %c0_8 = arith.constant 0 : index
    %17 = vector.load %arg5[%c0_7, %c0_8] : memref<32x16xbf16, #tpu.memory_space<vmem>>, vector<32x16xbf16>
    %cst_9 = arith.constant dense<0.000000e+00> : vector<32x128xf32>
    %18 = tpu.matmul %17, %16, %cst_9 {dimension_numbers = #tpu.dot_dimension_numbers<[1], [0], [0], [1], [0, 0, 1, 1], [], []>} : vector<32x16xbf16>, vector<16x128xbf16>, vector<32x128xf32> -> vector<32x128xf32>
    %cst_10 = arith.constant 0.000000e+00 : f32
    %19 = vector.broadcast %cst_10 : f32 to vector<32x128xf32>
    %20 = arith.maximumf %18, %19 : vector<32x128xf32>
    %c0_11 = arith.constant 0 : index
    %c0_12 = arith.constant 0 : index
    %21 = vector.load %arg6[%c0_11, %c0_12] : memref<32x128xbf16, #tpu.memory_space<vmem>>, vector<32x128xbf16>
    %22 = arith.extf %21 : vector<32x128xbf16> to vector<32x128xf32>
    %23 = arith.mulf %20, %22 : vector<32x128xf32>
    %24 = arith.truncf %23 : vector<32x128xf32> to vector<32x128xbf16>
    %c0_13 = arith.constant 0 : index
    %c0_14 = arith.constant 0 : index
    %25 = vector.load %arg7[%c0_13, %c0_14] : memref<16x32xbf16, #tpu.memory_space<vmem>>, vector<16x32xbf16>
    %cst_15 = arith.constant dense<0.000000e+00> : vector<16x128xf32>
    %26 = tpu.matmul %25, %24, %cst_15 {dimension_numbers = #tpu.dot_dimension_numbers<[1], [0], [0], [1], [0, 0, 1, 1], [], []>} : vector<16x32xbf16>, vector<32x128xbf16>, vector<16x128xf32> -> vector<16x128xf32>
    %c0_16 = arith.constant 0 : index
    %c0_17 = arith.constant 0 : index
    %c0_18 = arith.constant 0 : index
    %27 = vector.load %arg8[%c0_16, %c0_17, %c0_18] : memref<1x16x128xf32, #tpu.memory_space<vmem>>, vector<1x16x128xf32>
    %28 = vector.shape_cast %27 : vector<1x16x128xf32> to vector<16x128xf32>
    %29 = vector.shape_cast %26 : vector<16x128xf32> to vector<1x16x128xf32>
    tpu.vector_store %arg8[%c0_16, %c0_17, %c0_18], %29 {strides = array<i32>} : memref<1x16x128xf32, #tpu.memory_space<vmem>>, vector<1x16x128xf32>,
    return
  }
  func.func @transform_0(%arg0: i32, %arg1: i32) -> (i32, i32, i32) {
    %c0_i32 = arith.constant 0 : i32
    %c0_i32_0 = arith.constant 0 : i32
    return %arg0, %c0_i32, %arg1 : i32, i32, i32
  }
  func.func @transform_1(%arg0: i32, %arg1: i32) -> (i32, i32) {
    %c0_i32 = arith.constant 0 : i32
    %c0_i32_0 = arith.constant 0 : i32
    %c0_i32_1 = arith.constant 0 : i32
    return %c0_i32, %c0_i32_0 : i32, i32
  }
  func.func @transform_2(%arg0: i32, %arg1: i32) -> (i32, i32) {
    %c0_i32 = arith.constant 0 : i32
    %c0_i32_0 = arith.constant 0 : i32
    %c0_i32_1 = arith.constant 0 : i32
    return %c0_i32, %c0_i32_0 : i32, i32
  }
  func.func @transform_3(%arg0: i32, %arg1: i32) -> (i32, i32) {
    %c0_i32 = arith.constant 0 : i32
    %c0_i32_0 = arith.constant 0 : i32
    %c0_i32_1 = arith.constant 0 : i32
    return %c0_i32, %c0_i32_0 : i32, i32
  }
  func.func @transform_4(%arg0: i32, %arg1: i32) -> (i32, i32) {
    %c0_i32 = arith.constant 0 : i32
    %c0_i32_0 = arith.constant 0 : i32
    return %c0_i32, %arg1 : i32, i32
  }
  func.func @transform_5(%arg0: i32, %arg1: i32) -> (i32, i32) {
    %c0_i32 = arith.constant 0 : i32
    %c0_i32_0 = arith.constant 0 : i32
    %c0_i32_1 = arith.constant 0 : i32
    return %c0_i32, %c0_i32_0 : i32, i32
  }
  func.func @transform_6(%arg0: i32, %arg1: i32) -> (i32, i32, i32) {
    %c0_i32 = arith.constant 0 : i32
    %c0_i32_0 = arith.constant 0 : i32
    return %arg0, %c0_i32, %arg1 : i32, i32, i32
  }
}

</mosaic_0001>

<bundles_post_ra>
// kernel: single_decoder_forward.2
= control target key start
LH: loop header
LB: loop body
LE: loop exit
PB: predicated region body
PF: predicated region fallthrough
CT: control target
= control target key end

     0   :  { %s572_s17 = smov 0   ;;  %s574_s18 = smov 0   ;;  %s629_s0 = inlined_call_operand.<no memory space> [shape: f32[1], index: 0, kind: input, shape index: {}]   ;;  %s630_s1 = inlined_call_operand.vmem [shape: bf16[2,16,128], index: 1, kind: input, shape index: {}]   ;;  %s631_s2 = inlined_call_operand.vmem [shape: bf16[32,16], index: 2, kind: input, shape index: {}]   ;;  %s632_s3 = inlined_call_operand.vmem [shape: f32[32,1], index: 3, kind: input, shape index: {}]   ;;  %s633_s4 = inlined_call_operand.vmem [shape: bf16[2,32,128], index: 4, kind: output, shape index: {}]  }
   0x1   :  { %9 = sst [smem:[#allocation2]] %s629_s0  ;;  %s576_s19 = smov 0  }
   0x2 LB: > { %s27_s0 = sadd.s32 1, %s537_s18  ;;  %p445_p0 = scmp.ge.s32.totalorder %s541_s19, 1  ;;  %s541_s19 = sphi %s576_s19, %s15_s19   ;;  %s537_s18 = sphi %s574_s18, %s635_s18   ;;  %s533_s17 = sphi %s572_s17, %s634_s17  }
   0x3   : > { %p29_p1 = scmp.ge.s32.totalorder %s27_s0, 2  ;;  %p182_p2 = scmp.lt.s32.totalorder %s541_s19, 3 }
   0x5   : > { %s637_s0 = smov (%p29_p1, %s27_s0), 0  ;;  %p183_p3 = pnand %p445_p0, %p182_p2 }
   0x6   : > { %p214_p4 = scmp.lt.s32.totalorder (!%p183_p3), %s533_s17, 1  ;;  %s231_s20 = sld [smem:[#allocation2]] (!%p183_p3)  ;;  %v517_v0 = vld [vmem:[%s631_s2] sm:$0xff] (!%p183_p3)   ;;  %vm282_vm0 = vcmask (!%p183_p3), 130048   ;;  %v250_v1 = vld [vmem:[%s632_s3 + $0x10] sm:$0xff] (!%p183_p3)  ;;  %v543_v3 = vmov (!%p183_p3), 0  }
   0x7   : > { %186 = sbr.rel (%p183_p3) target bundleno = 249 (0xf9), region = 36  ;;  %486 = vmatprep.mubr.msk.bf16.mxu0 (!%p183_p3), %vm282_vm0, %v517_v0  ;;  %v248_v2 = vld [vmem:[%s632_s3] sm:$0xff] (!%p183_p3)  ;;  %516 = vset.pattern.permute.xlu1 (!%p183_p3), %v543_v3  ;;  %v251_v4 = vld [vmem:[%s632_s3 + $0x18] sm:$0xff] (!%p183_p3)  ;;  %v249_v5 = vld [vmem:[%s632_s3 + $0x8] sm:$0xff] (!%p183_p3) }
   0x8   : > { %515 = vset.pattern.permute.xlu0 (!%p183_p3), %v543_v3  ;;  %264 = vperm.xlu1 (!%p183_p3), %516, %v250_v1   ;;  %v518_v15 = vld [vmem:[%s631_s2 + $0x8] sm:$0xff] (!%p183_p3)  }
   0x9   : > { %254 = vperm.xlu0 (!%p183_p3), %515, %v248_v2  }
   0xc   : > { %v238_v7 = vstv (!%p183_p3), %s231_s20  ;;  %269 = vperm.xlu1 (!%p183_p3), %516, %v251_v4  }
   0xd   : > { %259 = vperm.xlu0 (!%p183_p3), %515, %v249_v5  }
   0xe   : > { %s639_s17 = smov (!%p214_p4, %s533_s17), 1 }
   0xf   : > { %s460_s27 = sshll.u32 %s639_s17, 3  ;;  %s461_s11 = sshll.u32 %s639_s17, 4 }
  0x10   : > { %s221_s30 = scalar_lea.vmem %s630_s1, %s460_s27  ;;  %s229_s14 = scalar_lea.vmem %s633_s4, %s461_s11 }
  0x11   : > { %v467_v6 = vld [vmem:[%s221_s30] sm:$0xff]  }
  0x12   : > { %v468_v8 = vunpack.c.l.bf16 %v467_v6  ;;  %v469_v9 = vunpack.c.h.bf16 %v467_v6 }
  0x14   : > { %vm236_vm1 = vcmp.gt.f32.partialorder %v468_v8, 0.0  ;;  %vm237_vm2 = vcmp.gt.f32.partialorder %v469_v9, 0.0  ;;  %v239_v10 = vmul.f32 %v468_v8, %v238_v7  ;;  %v240_v11 = vmul.f32 %v469_v9, %v238_v7 }
  0x16   : > { %v241_v12 = vsel %vm236_vm1, %v468_v8, %v239_v10  ;;  %v242_v13 = vsel %vm237_vm2, %v469_v9, %v240_v11 }
  0x17   : > { %v243_v14 = vpack.c.bf16 %v242_v13, %v241_v12 }
  0x19   : > { %484 = vmatprep.subr.bf16.mxu0 %v243_v14 }
  0x1a   : > { %485 = vmatpush3.bf16.msra.mxu0 %v243_v14 }
  0x1d   : > { %487 = vmatmul.mubr.msk.bf16.vlgmr.msra.gmra.mrb[0].mxu0 %vm282_vm0, %v518_v15 }
  0x87   : > { %v265_v16 = vpop.permute.xlu1 %264 }
  0x88   : > { %v255_v17 = vpop.permute.xlu0 %254 }
  0x8b   : > { %v270_v20 = vpop.permute.xlu1 %269 }
  0x8c   : > { %v260_v22 = vpop.permute.xlu0 %259 }
  0xf0   : > { %v488_v18 = vpop.f32.mrb[0].mxu0 }
  0xf1   : > { %v323_v19 = vpop.f32.mrb[1].mxu0  ;;  %v332_v23 = vadd.f32 %v488_v18, %v265_v16 }
  0xf2   : > { %v489_v21 = vpop.f32.mrb[2].mxu0  ;;  %v324_v26 = vadd.f32 %v323_v19, %v255_v17 }
  0xf3   : > { %v335_v24 = vadd.f32 %v489_v21, %v270_v20  ;;  %v326_v25 = vpop.f32.mrb[3].mxu0 }
  0xf4   : > { %v327_v27 = vadd.f32 %v326_v25, %v260_v22 }
  0xf5   : > { %v478_v28 = vpack.c.bf16 %v335_v24, %v332_v23 }
  0xf6   : > { %v473_v29 = vpack.c.bf16 %v327_v27, %v324_v26 }
  0xf7   : > { %480 = vst [vmem:[%s229_s14 + $0x8] sm:$0xff] %v478_v28  }
  0xf8   : > { %474 = vst [vmem:[%s229_s14] sm:$0xff] %v473_v29  }
  0xf9 PF: > { %s15_s19 = sadd.s32 1, %s541_s19   ;;  %s634_s17 = smov %s537_s18 }
  0xfa   : > { %p12_p5 = scmp.ge.s32.totalorder %s15_s19, 4   ;;  %s635_s18 = smov %s637_s0 }
  0xfc   :  { %14 = sbr.rel (!%p12_p5) target bundleno = 2 (0x2), region = 66 }

// kernel: single_decoder_forward.3
= control target key start
LH: loop header
LB: loop body
LE: loop exit
PB: predicated region body
PF: predicated region fallthrough
CT: control target
= control target key end

     0   :  { %s834_s21 = smov 0   ;;  %s836_s22 = smov 0   ;;  %s908_s0 = inlined_call_operand.vmem [shape: bf16[4,16,128], index: 0, kind: input, shape index: {}]   ;;  %s909_s1 = inlined_call_operand.vmem [shape: bf16[32,16], index: 1, kind: input, shape index: {}]   ;;  %s910_s2 = inlined_call_operand.vmem [shape: f32[32,1], index: 2, kind: input, shape index: {}]   ;;  %s911_s3 = inlined_call_operand.vmem [shape: bf16[32,16], index: 3, kind: input, shape index: {}]   ;;  %s912_s4 = inlined_call_operand.vmem [shape: bf16[32,128], index: 4, kind: input, shape index: {}]   ;;  %s913_s5 = inlined_call_operand.vmem [shape: bf16[16,32], index: 5, kind: input, shape index: {}]   ;;  %s914_s6 = inlined_call_operand.vmem [shape: f32[4,16,128], index: 6, kind: output, shape index: {}]  }
   0x1   :  { %s838_s23 = smov 0  }
   0x2 LB: > { %s28_s24 = sadd.s32 1, %s790_s22  ;;  %p665_p0 = scmp.ge.s32.totalorder %s794_s23, 1  ;;  %s794_s23 = sphi %s838_s23, %s16_s23   ;;  %s790_s22 = sphi %s836_s22, %s916_s22   ;;  %s786_s21 = sphi %s834_s21, %s915_s21  }
   0x3   : > { %p30_p1 = scmp.ge.s32.totalorder %s28_s24, 4  ;;  %p240_p2 = scmp.lt.s32.totalorder %s794_s23, 5 }
   0x5   : > { %s918_s24 = smov (%p30_p1, %s28_s24), 0  ;;  %p241_p3 = pnand %p665_p0, %p240_p2 }
   0x6   : > { %p280_p4 = scmp.lt.s32.totalorder (!%p241_p3), %s786_s21, 3  ;;  %v755_v0 = vld [vmem:[%s909_s1] sm:$0xff] (!%p241_p3)   ;;  %vm347_vm0 = vcmask (!%p241_p3), 130048   ;;  %v309_v1 = vld [vmem:[%s910_s2 + $0x10] sm:$0xff] (!%p241_p3)  ;;  %v796_v3 = vmov (!%p241_p3), 0   ;;  %v310_v4 = vld [vmem:[%s910_s2 + $0x18] sm:$0xff] (!%p241_p3) }
   0x7   : > { %244 = sbr.rel (%p241_p3) target bundleno = 715 (0x2cb), region = 44  ;;  %707 = vmatprep.mubr.msk.bf16.mxu0 (!%p241_p3), %vm347_vm0, %v755_v0  ;;  %v307_v2 = vld [vmem:[%s910_s2] sm:$0xff] (!%p241_p3)  ;;  %752 = vset.pattern.permute.xlu0 (!%p241_p3), %v796_v3  ;;  %v308_v5 = vld [vmem:[%s910_s2 + $0x8] sm:$0xff] (!%p241_p3)  ;;  %v797_v35 = vmov (!%p241_p3), 0.0   ;;  %vm798_vm1 = vmmov (!%p241_p3), 0   ;;  %vm514_vm2 = vcmask (!%p241_p3), 261120  }
   0x8   : > { %753 = vset.pattern.permute.xlu1 (!%p241_p3), %v796_v3  ;;  %323 = vperm.xlu0 (!%p241_p3), %752, %v309_v1   ;;  %v756_v7 = vld [vmem:[%s909_s1 + $0x8] sm:$0xff] (!%p241_p3)   ;;  %v757_v8 = vld [vmem:[%s911_s3] sm:$0xff] (!%p241_p3)  }
   0x9   : > { %313 = vperm.xlu1 (!%p241_p3), %753, %v307_v2   ;;  %713 = vmatprep.mubr.msk.bf16.mxu1 (!%p241_p3), %vm347_vm0, %v757_v8  ;;  %v758_v34 = vld [vmem:[%s911_s3 + $0x8] sm:$0xff] (!%p241_p3)   ;;  %v688_v37 = vld [vmem:[%s912_s4] sm:$0xff] (!%p241_p3)  }
   0xa   : > { %v695_v36 = vld [vmem:[%s912_s4 + $0x8] sm:$0xff] (!%p241_p3)   ;;  %v689_v44 = vunpack.c.l.bf16 (!%p241_p3), %v688_v37  ;;  %v690_v46 = vunpack.c.h.bf16 (!%p241_p3), %v688_v37  ;;  %v759_v56 = vld [vmem:[%s913_s5] sm:$0xff] (!%p241_p3)  }
   0xb   : > { %v693_v40 = vunpack.c.l.bf16 (!%p241_p3), %v695_v36  ;;  %v694_v42 = vunpack.c.h.bf16 (!%p241_p3), %v695_v36 }
   0xc   : > { %328 = vperm.xlu0 (!%p241_p3), %752, %v310_v4  }
   0xd   : > { %318 = vperm.xlu1 (!%p241_p3), %753, %v308_v5  }
   0xe   : > { %s920_s21 = smov (!%p280_p4, %s786_s21), 3 }
   0xf   : > { %s685_s7 = sshll.u32 %s920_s21, 3 }
  0x10   : > { %s287_s12 = scalar_lea.vmem %s908_s0, %s685_s7  ;;  %s686_s7 = sshll.u32 %s920_s21, 4 }
  0x11   : > { %v754_v6 = vld [vmem:[%s287_s12] sm:$0xff]   ;;  %s299_s10 = scalar_lea.vmem %s914_s6, %s686_s7 }
  0x12   : > { %705 = vmatprep.subr.bf16.mxu0 %v754_v6 }
  0x13   : > { %706 = vmatpush3.bf16.msra.mxu0 %v754_v6 }
  0x14   : > { %717 = vmatprep.subr.bf16.mxu0 %v797_v35 }
  0x16   : > { %708 = vmatmul.mubr.msk.bf16.vlgmr.msra.gmra.mrb[0].mxu0 %vm347_vm0, %v756_v7 }
  0x17   : > { %721 = vmatprep.mubr.msk.bf16.mxu0 %vm798_vm1, %v797_v35 }
  0x87   : > { %v324_v9 = vpop.permute.xlu0 %323 }
  0x88   : > { %v314_v19 = vpop.permute.xlu1 %313 }
  0x8b   : > { %v329_v13 = vpop.permute.xlu0 %328 }
  0x8c   : > { %v319_v20 = vpop.permute.xlu1 %318 }
  0xe9   : > { %v709_v10 = vpop.f32.mrb[0].mxu0 }
  0xea   : > { %v397_v11 = vadd.f32 %v709_v10, %v324_v9  ;;  %v388_v12 = vpop.f32.mrb[1].mxu0 }
  0xeb   : > { %v710_v14 = vpop.f32.mrb[2].mxu0  ;;  %v389_v21 = vadd.f32 %v388_v12, %v314_v19 }
  0xec   : > { %v675_v15 = vmul.f32 -1.442695, %v397_v11  ;;  %v400_v16 = vadd.f32 %v710_v14, %v329_v13  ;;  %v391_v17 = vpop.f32.mrb[3].mxu0 }
  0xed   : > { %v392_v23 = vadd.f32 %v391_v17, %v319_v20 }
  0xee   : > { %760 = vpow2.f32 %v675_v15  ;;  %v676_v18 = vmul.f32 -1.442695, %v400_v16 }
  0xf0   : > { %762 = vpow2.f32 %v676_v18 }
  0xf1   : > { %764 = vtanh.f32 %v389_v21 }
  0xf8   : > { %v761_v22 = vpop.eup %760 }
  0xf9   : > { %v411_v24 = vadd.f32 1.0, %v761_v22 }
  0xfa   : > { %v763_v25 = vpop.eup %762 }
  0xfb   : > { %766 = vrcp.f32 %v411_v24  ;;  %v412_v26 = vadd.f32 1.0, %v763_v25  ;;  %v765_v27 = vpop.eup %764 }
  0xfc   : > { %768 = vtanh.f32 %v392_v23 }
  0xfd   : > { %770 = vrcp.f32 %v412_v26 }
 0x105   : > { %v767_v28 = vpop.eup %766 }
 0x106   : > { %v769_v29 = vpop.eup %768  ;;  %v417_v30 = vmul.f32 %v767_v28, %v765_v27 }
 0x107   : > { %v771_v31 = vpop.eup %770 }
 0x108   : > { %v418_v32 = vmul.f32 %v771_v31, %v769_v29 }
 0x10a   : > { %v419_v33 = vpack.c.bf16 %v418_v32, %v417_v30 }
 0x10c   : > { %711 = vmatprep.subr.bf16.mxu1 %v419_v33 }
 0x10d   : > { %712 = vmatpush3.bf16.msra.mxu1 %v419_v33 }
 0x110   : > { %714 = vmatmul.mubr.msk.bf16.vlgmr.msra.gmra.mrb[0].mxu1 %vm347_vm0, %v758_v34 }
 0x1e3   : > { %v715_v38 = vpop.f32.mrb[0].mxu1 }
 0x1e4   : > { %v491_v39 = vmax.f32 %v715_v38, 0.0  ;;  %v474_v41 = vpop.f32.mrb[1].mxu1 }
 0x1e5   : > { %v489_v43 = vmax.f32 %v474_v41, 0.0  ;;  %v716_v45 = vpop.f32.mrb[2].mxu1 }
 0x1e6   : > { %v492_v47 = vmax.f32 %v716_v45, 0.0  ;;  %v477_v48 = vpop.f32.mrb[3].mxu1  ;;  %v503_v50 = vmul.f32 %v693_v40, %v491_v39 }
 0x1e7   : > { %v490_v49 = vmax.f32 %v477_v48, 0.0  ;;  %v501_v52 = vmul.f32 %v689_v44, %v489_v43 }
 0x1e8   : > { %v504_v51 = vmul.f32 %v694_v42, %v492_v47 }
 0x1e9   : > { %v502_v53 = vmul.f32 %v690_v46, %v490_v49 }
 0x1ea   : > { %v506_v54 = vpack.c.bf16 %v504_v51, %v503_v50 }
 0x1eb   : > { %v505_v55 = vpack.c.bf16 %v502_v53, %v501_v52 }
 0x1ed   : > { %718 = vmatpush3.bf16.msra.mxu0 %v505_v55 }
 0x1ee   : > { %719 = vmatprep.subr.bf16.mxu0 %v797_v35 }
 0x1f1   : > { %720 = vmatpush3.bf16.msra.mxu0 %v506_v54 }
 0x1f4   : > { %722 = vmatmul.mubr.msk.bf16.vlgmr.msra.gmra.mrb[4].mxu0 %vm514_vm2, %v759_v56 }
 0x2c7   : > { %v552_v57 = vpop.f32.mrb[4].mxu0 }
 0x2c8   : > { %559 = vst [vmem:[%s299_s10] sm:$0xff] %v552_v57  ;;  %v723_v58 = vpop.f32.mrb[5].mxu0 }
 0x2c9   : > { %v555_v59 = vpop.f32.mrb[6].mxu0 }
 0x2ca   : > { %560 = vst [vmem:[%s299_s10 + $0x8] sm:$0xff] %v555_v59  ;;  %v724_v60 = vpop.f32.mrb[7].mxu0 }
 0x2cb PF: > { %s16_s23 = sadd.s32 1, %s794_s23   ;;  %s915_s21 = smov %s790_s22 }
 0x2cc   : > { %p13_p5 = scmp.ge.s32.totalorder %s16_s23, 6   ;;  %s916_s22 = smov %s918_s24 }
 0x2ce   :  { %15 = sbr.rel (!%p13_p5) target bundleno = 2 (0x2), region = 77 }

</bundles_post_ra>
